<compile_context>
chip_gen: v7x
topology: tpu7x:2x2x1
jax: 0.10.0
libtpu: 0.0.40
codegen_flags: <defaults>
</compile_context>

<pallas_src>
import math
import functools

import jax
import jax.numpy as jnp
import numpy as np
from jax.experimental import pallas as pl
from jax.experimental.pallas import tpu as pltpu


def _lateral_attention_kernel(mix_with, nH, Dh, compute_dtype,
                              h_ref, w_ref, b_ref, lat_ref, o_ref):
    """One batch element: fused QKV projection + per-head lateral mix + attention.

    h_ref:   (1, S, H)        hidden states for this batch element
    w_ref:   (H, 3H)          fused [Wq | Wk | Wv] (resident across the grid)
    b_ref:   (1, 3H)          fused [bq | bk | bv]
    lat_ref: (1, nH, S, Dh)   lateral states for this batch element
    o_ref:   (1, S, H)        lane-dense output block
    """
    H = h_ref.shape[2]

    x = h_ref[0].astype(compute_dtype)          # (S, H)
    w = w_ref[...].astype(compute_dtype)        # (H, 3H)
    b = b_ref[...].astype(jnp.float32)          # (1, 3H)

    # Fused Q/K/V projection: a single wide MXU matmul, f32 accumulation.
    qkv = jnp.dot(x, w, preferred_element_type=jnp.float32) + b   # (S, 3H) f32

    inv_sqrt_dh = 1.0 / math.sqrt(Dh)
    approx_recip = (compute_dtype == jnp.bfloat16)

    ctx_heads = []
    for h in range(nH):                                   # static unroll (nH is small)
        q_h = qkv[:, h * Dh:(h + 1) * Dh]                  # (S, Dh) f32
        k_h = qkv[:, H + h * Dh:H + (h + 1) * Dh]          # (S, Dh) f32
        v_h = qkv[:, 2 * H + h * Dh:2 * H + (h + 1) * Dh]  # (S, Dh) f32
        lat_h = lat_ref[0, h].astype(jnp.float32)          # (S, Dh) contiguous slab load

        # Lateral multiplicative mix (mix_with is a static Python string -> compiled in;
        # validated in the wrapper).
        if mix_with == 'q':
            q_h = q_h * lat_h
        elif mix_with == 'k':
            k_h = k_h * lat_h
        else:  # 'v'
            v_h = v_h * lat_h

        # Scale q (S*Dh elements) instead of scores (S*S elements).
        q_h = q_h * inv_sqrt_dh

        scores = jnp.dot(q_h.astype(compute_dtype),
                         k_h.astype(compute_dtype).T,
                         preferred_element_type=jnp.float32)       # (S, S) f32

        # Numerically-stable softmax; statistics stay in f32.
        m = jnp.max(scores, axis=-1, keepdims=True)
        p = jnp.exp(scores - m)
        l = jnp.sum(p, axis=-1, keepdims=True)                     # (S, 1)

        ctx = jnp.dot(p.astype(compute_dtype),
                      v_h.astype(compute_dtype),
                      preferred_element_type=jnp.float32)          # (S, Dh)
        # Fold the softmax denominator into the (much smaller) context instead of p.
        ctx = ctx * pl.reciprocal(l, approx=approx_recip)
        ctx_heads.append(ctx)

    # Re-assemble the head-major contexts along the lane axis in vregs and do ONE dense
    # (unmasked) store of the whole (S, H) block — no per-head masked column stores.
    out = jnp.concatenate(ctx_heads, axis=-1)                      # (S, H) f32
    o_ref[0] = out.astype(o_ref.dtype)


def lateral_attention(hidden_states, lateral_states,
                      wq, wk, wv, bq, bk, bv,
                      mix_with='q', compute_dtype=None):
    """hidden_states: (B, S, H); lateral_states: (B, nH, S, Dh);
       wq/wk/wv: (H, H) ("x @ W" orientation, i.e. nn.Linear weight.T); bq/bk/bv: (H,).
       Returns (B, S, H)."""
    if mix_with not in ('q', 'k', 'v'):
        raise ValueError("Only 'q', 'k', 'v' values are permitted for lateral connections")

    B, S, H = hidden_states.shape
    _, nH, Slat, Dh = lateral_states.shape
    assert Slat == S and nH * Dh == H

    if compute_dtype is None:
        compute_dtype = hidden_states.dtype

    # Fuse weights/biases once (tiny, one-time op on parameters — not activations).
    w_all = jnp.concatenate([wq, wk, wv], axis=-1)                   # (H, 3H)
    b_all = jnp.concatenate([bq, bk, bv], axis=-1).reshape(1, 3 * H)

    kernel = functools.partial(_lateral_attention_kernel, mix_with, nH, Dh, compute_dtype)

    itemsize = np.dtype(hidden_states.dtype).itemsize
    flops = B * (2 * S * H * (3 * H) + nH * (2 * S * S * Dh) * 2)
    transcendentals = B * nH * S * S                                 # exp() in softmax
    bytes_accessed = (hidden_states.size + w_all.size + b_all.size
                      + lateral_states.size + B * S * H) * itemsize

    out = pl.pallas_call(
        kernel,
        out_shape=jax.ShapeDtypeStruct((B, S, H), hidden_states.dtype),
        grid_spec=pl.GridSpec(
            grid=(B,),
            in_specs=[
                pl.BlockSpec((1, S, H), lambda b: (b, 0, 0)),          # hidden_states
                pl.BlockSpec((H, 3 * H), lambda b: (0, 0)),            # fused weights (DMA once)
                pl.BlockSpec((1, 3 * H), lambda b: (0, 0)),            # fused biases  (DMA once)
                pl.BlockSpec((1, nH, S, Dh), lambda b: (b, 0, 0, 0)),  # lateral_states
            ],
            out_specs=pl.BlockSpec((1, S, H), lambda b: (b, 0, 0)),    # lane-dense output
        ),
        compiler_params=pltpu.CompilerParams(
            dimension_semantics=("parallel",)),
        cost_estimate=pl.CostEstimate(flops=flops,
                                      transcendentals=transcendentals,
                                      bytes_accessed=bytes_accessed),
    )(hidden_states, w_all, b_all, lateral_states)

    return out


def _reference(hidden_states, lateral_states, wq, wk, wv, bq, bk, bv, mix_with):
    """Pure-JAX reference matching the PyTorch forward."""
    B, S, H = hidden_states.shape
    _, nH, _, Dh = lateral_states.shape

    def proj(w, b):
        y = hidden_states @ w + b                               # (B, S, H)
        return y.reshape(B, S, nH, Dh).transpose(0, 2, 1, 3)    # transpose_for_scores

    q = proj(wq, bq)
    k = proj(wk, bk)
    v = proj(wv, bv)
    if mix_with == 'q':
        q = q * lateral_states
    elif mix_with == 'k':
        k = k * lateral_states
    elif mix_with == 'v':
        v = v * lateral_states
    scores = jnp.einsum('bnqd,bnkd->bnqk', q, k) / math.sqrt(Dh)
    probs = jax.nn.softmax(scores, axis=-1)
    ctx = jnp.einsum('bnqk,bnkd->bnqd', probs, v)
    return ctx.transpose(0, 2, 1, 3).reshape(B, S, H)


if __name__ == "__main__":
    # Small ViT-like config: hidden=32, heads=4, head_dim=8, seq=8, batch=2.
    B, S, H, nH = 2, 8, 32, 4
    Dh = H // nH

    key = jax.random.PRNGKey(0)
    ks = jax.random.split(key, 8)
    hidden_states = jax.random.normal(ks[0], (B, S, H), dtype=jnp.float32)
    lateral_states = jax.random.normal(ks[1], (B, nH, S, Dh), dtype=jnp.float32)

    scale = 1.0 / math.sqrt(H)
    wq = jax.random.normal(ks[2], (H, H), dtype=jnp.float32) * scale
    wk = jax.random.normal(ks[3], (H, H), dtype=jnp.float32) * scale
    wv = jax.random.normal(ks[4], (H, H), dtype=jnp.float32) * scale
    bq = jax.random.normal(ks[5], (H,), dtype=jnp.float32) * scale
    bk = jax.random.normal(ks[6], (H,), dtype=jnp.float32) * scale
    bv = jax.random.normal(ks[7], (H,), dtype=jnp.float32) * scale

    # f32 path: strict check against the pure-JAX reference for all three mix modes.
    for mix_with in ('q', 'k', 'v'):
        out = lateral_attention(hidden_states, lateral_states,
                                wq, wk, wv, bq, bk, bv, mix_with=mix_with)
        out = jax.block_until_ready(out)
        ref = _reference(hidden_states, lateral_states, wq, wk, wv, bq, bk, bv, mix_with)
        assert out.shape == (B, S, H)
        np.testing.assert_allclose(np.asarray(out), np.asarray(ref), rtol=1e-5, atol=1e-5)

    # bf16 operand path (half HBM traffic, 2x MXU rate); f32 accumulation + softmax stats.
    bf = jnp.bfloat16
    out_bf16 = lateral_attention(hidden_states.astype(bf), lateral_states.astype(bf),
                                 wq.astype(bf), wk.astype(bf), wv.astype(bf),
                                 bq.astype(bf), bk.astype(bf), bv.astype(bf),
                                 mix_with='q', compute_dtype=bf)
    out_bf16 = jax.block_until_ready(out_bf16)
    ref_q = _reference(hidden_states, lateral_states, wq, wk, wv, bq, bk, bv, 'q')
    np.testing.assert_allclose(np.asarray(out_bf16.astype(jnp.float32)),
                               np.asarray(ref_q), rtol=1e-1, atol=1e-1)

    print("KERNEL_OK")
</pallas_src>

<mosaic_0001>
module attributes {stable_mosaic.version = 11 : i64} {
  func.func @_lateral_attention_kernel(%arg0: i32, %arg1: memref<1x8x32xf32, #tpu.memory_space<vmem>>, %arg2: memref<32x96xf32, #tpu.memory_space<vmem>>, %arg3: memref<1x96xf32, #tpu.memory_space<vmem>>, %arg4: memref<1x4x8x8xf32, #tpu.memory_space<vmem>>, %arg5: memref<1x8x32xf32, #tpu.memory_space<vmem>>) attributes {dimension_semantics = [#tpu.dimension_semantics<parallel>], iteration_bounds = array<i64: 2>, scalar_prefetch = 0 : i64, scratch_operands = 0 : i64, tpu.core_type = #tpu.core_type<tc>, window_params = [{transform_indices = @transform_0, window_bounds = array<i64: 1, 8, 32>}, {pipeline_mode = #tpu.pipeline_mode<synchronous>, transform_indices = @transform_1, window_bounds = array<i64: 32, 96>}, {pipeline_mode = #tpu.pipeline_mode<synchronous>, transform_indices = @transform_2, window_bounds = array<i64: 1, 96>}, {transform_indices = @transform_3, window_bounds = array<i64: 1, 4, 8, 8>}, {transform_indices = @transform_4, window_bounds = array<i64: 1, 8, 32>}]} {
    %c0 = arith.constant 0 : index
    %c0_0 = arith.constant 0 : index
    %c0_1 = arith.constant 0 : index
    %0 = vector.load %arg1[%c0, %c0_0, %c0_1] : memref<1x8x32xf32, #tpu.memory_space<vmem>>, vector<1x8x32xf32>
    %1 = vector.shape_cast %0 : vector<1x8x32xf32> to vector<8x32xf32>
    %c0_2 = arith.constant 0 : index
    %c0_3 = arith.constant 0 : index
    %2 = vector.load %arg2[%c0_2, %c0_3] : memref<32x96xf32, #tpu.memory_space<vmem>>, vector<32x96xf32>
    %c0_4 = arith.constant 0 : index
    %c0_5 = arith.constant 0 : index
    %3 = vector.load %arg3[%c0_4, %c0_5] : memref<1x96xf32, #tpu.memory_space<vmem>>, vector<1x96xf32>
    %cst = arith.constant dense<0.000000e+00> : vector<8x96xf32>
    %4 = tpu.matmul %1, %2, %cst {dimension_numbers = #tpu.dot_dimension_numbers<[1], [0], [0], [1], [0, 0, 1, 1], [], []>} : vector<8x32xf32>, vector<32x96xf32>, vector<8x96xf32> -> vector<8x96xf32>
    %5 = vector.broadcast %3 : vector<1x96xf32> to vector<8x96xf32>
    %6 = arith.addf %4, %5 : vector<8x96xf32>
    %7 = vector.extract_strided_slice %6 {offsets = [0, 0], sizes = [8, 8], strides = [1, 1]} : vector<8x96xf32> to vector<8x8xf32>
    %8 = vector.extract_strided_slice %6 {offsets = [0, 32], sizes = [8, 8], strides = [1, 1]} : vector<8x96xf32> to vector<8x8xf32>
    %9 = vector.extract_strided_slice %6 {offsets = [0, 64], sizes = [8, 8], strides = [1, 1]} : vector<8x96xf32> to vector<8x8xf32>
    %c0_6 = arith.constant 0 : index
    %c0_7 = arith.constant 0 : index
    %c0_8 = arith.constant 0 : index
    %c0_9 = arith.constant 0 : index
    %10 = vector.load %arg4[%c0_6, %c0_7, %c0_8, %c0_9] : memref<1x4x8x8xf32, #tpu.memory_space<vmem>>, vector<1x1x8x8xf32>
    %11 = vector.shape_cast %10 : vector<1x1x8x8xf32> to vector<8x8xf32>
    %12 = arith.mulf %7, %11 : vector<8x8xf32>
    %cst_10 = arith.constant 0.353553385 : f32
    %13 = vector.broadcast %cst_10 : f32 to vector<8x8xf32>
    %14 = arith.mulf %12, %13 : vector<8x8xf32>
    %15 = tpu.transpose %8, [1, 0] : vector<8x8xf32> -> vector<8x8xf32>
    %cst_11 = arith.constant dense<0.000000e+00> : vector<8x8xf32>
    %16 = tpu.matmul %14, %15, %cst_11 {dimension_numbers = #tpu.dot_dimension_numbers<[1], [0], [0], [1], [0, 0, 1, 1], [], []>} : vector<8x8xf32>, vector<8x8xf32>, vector<8x8xf32> -> vector<8x8xf32>
    %cst_12 = arith.constant dense<0xFF800000> : vector<8xf32>
    %17 = vector.multi_reduction <maximumf>, %16, %cst_12 [1] : vector<8x8xf32> to vector<8xf32>
    %18 = vector.shape_cast %17 : vector<8xf32> to vector<8x1xf32>
    %19 = vector.broadcast %18 : vector<8x1xf32> to vector<8x8xf32>
    %20 = arith.subf %16, %19 : vector<8x8xf32>
    %21 = math.exp %20 : vector<8x8xf32>
    %cst_13 = arith.constant dense<0.000000e+00> : vector<8xf32>
    %22 = vector.multi_reduction <add>, %21, %cst_13 [1] : vector<8x8xf32> to vector<8xf32>
    %23 = vector.shape_cast %22 : vector<8xf32> to vector<8x1xf32>
    %cst_14 = arith.constant dense<0.000000e+00> : vector<8x8xf32>
    %24 = tpu.matmul %21, %9, %cst_14 {dimension_numbers = #tpu.dot_dimension_numbers<[1], [0], [0], [1], [0, 0, 1, 1], [], []>} : vector<8x8xf32>, vector<8x8xf32>, vector<8x8xf32> -> vector<8x8xf32>
    %25 = tpu.reciprocal %23 : vector<8x1xf32> -> vector<8x1xf32>
    %26 = vector.broadcast %25 : vector<8x1xf32> to vector<8x8xf32>
    %27 = arith.mulf %24, %26 : vector<8x8xf32>
    %28 = vector.extract_strided_slice %6 {offsets = [0, 8], sizes = [8, 8], strides = [1, 1]} : vector<8x96xf32> to vector<8x8xf32>
    %29 = vector.extract_strided_slice %6 {offsets = [0, 40], sizes = [8, 8], strides = [1, 1]} : vector<8x96xf32> to vector<8x8xf32>
    %30 = vector.extract_strided_slice %6 {offsets = [0, 72], sizes = [8, 8], strides = [1, 1]} : vector<8x96xf32> to vector<8x8xf32>
    %c0_15 = arith.constant 0 : index
    %c1 = arith.constant 1 : index
    %c0_16 = arith.constant 0 : index
    %c0_17 = arith.constant 0 : index
    %31 = vector.load %arg4[%c0_15, %c1, %c0_16, %c0_17] : memref<1x4x8x8xf32, #tpu.memory_space<vmem>>, vector<1x1x8x8xf32>
    %32 = vector.shape_cast %31 : vector<1x1x8x8xf32> to vector<8x8xf32>
    %33 = arith.mulf %28, %32 : vector<8x8xf32>
    %cst_18 = arith.constant 0.353553385 : f32
    %34 = vector.broadcast %cst_18 : f32 to vector<8x8xf32>
    %35 = arith.mulf %33, %34 : vector<8x8xf32>
    %36 = tpu.transpose %29, [1, 0] : vector<8x8xf32> -> vector<8x8xf32>
    %cst_19 = arith.constant dense<0.000000e+00> : vector<8x8xf32>
    %37 = tpu.matmul %35, %36, %cst_19 {dimension_numbers = #tpu.dot_dimension_numbers<[1], [0], [0], [1], [0, 0, 1, 1], [], []>} : vector<8x8xf32>, vector<8x8xf32>, vector<8x8xf32> -> vector<8x8xf32>
    %cst_20 = arith.constant dense<0xFF800000> : vector<8xf32>
    %38 = vector.multi_reduction <maximumf>, %37, %cst_20 [1] : vector<8x8xf32> to vector<8xf32>
    %39 = vector.shape_cast %38 : vector<8xf32> to vector<8x1xf32>
    %40 = vector.broadcast %39 : vector<8x1xf32> to vector<8x8xf32>
    %41 = arith.subf %37, %40 : vector<8x8xf32>
    %42 = math.exp %41 : vector<8x8xf32>
    %cst_21 = arith.constant dense<0.000000e+00> : vector<8xf32>
    %43 = vector.multi_reduction <add>, %42, %cst_21 [1] : vector<8x8xf32> to vector<8xf32>
    %44 = vector.shape_cast %43 : vector<8xf32> to vector<8x1xf32>
    %cst_22 = arith.constant dense<0.000000e+00> : vector<8x8xf32>
    %45 = tpu.matmul %42, %30, %cst_22 {dimension_numbers = #tpu.dot_dimension_numbers<[1], [0], [0], [1], [0, 0, 1, 1], [], []>} : vector<8x8xf32>, vector<8x8xf32>, vector<8x8xf32> -> vector<8x8xf32>
    %46 = tpu.reciprocal %44 : vector<8x1xf32> -> vector<8x1xf32>
    %47 = vector.broadcast %46 : vector<8x1xf32> to vector<8x8xf32>
    %48 = arith.mulf %45, %47 : vector<8x8xf32>
    %49 = vector.extract_strided_slice %6 {offsets = [0, 16], sizes = [8, 8], strides = [1, 1]} : vector<8x96xf32> to vector<8x8xf32>
    %50 = vector.extract_strided_slice %6 {offsets = [0, 48], sizes = [8, 8], strides = [1, 1]} : vector<8x96xf32> to vector<8x8xf32>
    %51 = vector.extract_strided_slice %6 {offsets = [0, 80], sizes = [8, 8], strides = [1, 1]} : vector<8x96xf32> to vector<8x8xf32>
    %c0_23 = arith.constant 0 : index
    %c2 = arith.constant 2 : index
    %c0_24 = arith.constant 0 : index
    %c0_25 = arith.constant 0 : index
    %52 = vector.load %arg4[%c0_23, %c2, %c0_24, %c0_25] : memref<1x4x8x8xf32, #tpu.memory_space<vmem>>, vector<1x1x8x8xf32>
    %53 = vector.shape_cast %52 : vector<1x1x8x8xf32> to vector<8x8xf32>
    %54 = arith.mulf %49, %53 : vector<8x8xf32>
    %cst_26 = arith.constant 0.353553385 : f32
    %55 = vector.broadcast %cst_26 : f32 to vector<8x8xf32>
    %56 = arith.mulf %54, %55 : vector<8x8xf32>
    %57 = tpu.transpose %50, [1, 0] : vector<8x8xf32> -> vector<8x8xf32>
    %cst_27 = arith.constant dense<0.000000e+00> : vector<8x8xf32>
    %58 = tpu.matmul %56, %57, %cst_27 {dimension_numbers = #tpu.dot_dimension_numbers<[1], [0], [0], [1], [0, 0, 1, 1], [], []>} : vector<8x8xf32>, vector<8x8xf32>, vector<8x8xf32> -> vector<8x8xf32>
    %cst_28 = arith.constant dense<0xFF800000> : vector<8xf32>
    %59 = vector.multi_reduction <maximumf>, %58, %cst_28 [1] : vector<8x8xf32> to vector<8xf32>
    %60 = vector.shape_cast %59 : vector<8xf32> to vector<8x1xf32>
    %61 = vector.broadcast %60 : vector<8x1xf32> to vector<8x8xf32>
    %62 = arith.subf %58, %61 : vector<8x8xf32>
    %63 = math.exp %62 : vector<8x8xf32>
    %cst_29 = arith.constant dense<0.000000e+00> : vector<8xf32>
    %64 = vector.multi_reduction <add>, %63, %cst_29 [1] : vector<8x8xf32> to vector<8xf32>
    %65 = vector.shape_cast %64 : vector<8xf32> to vector<8x1xf32>
    %cst_30 = arith.constant dense<0.000000e+00> : vector<8x8xf32>
    %66 = tpu.matmul %63, %51, %cst_30 {dimension_numbers = #tpu.dot_dimension_numbers<[1], [0], [0], [1], [0, 0, 1, 1], [], []>} : vector<8x8xf32>, vector<8x8xf32>, vector<8x8xf32> -> vector<8x8xf32>
    %67 = tpu.reciprocal %65 : vector<8x1xf32> -> vector<8x1xf32>
    %68 = vector.broadcast %67 : vector<8x1xf32> to vector<8x8xf32>
    %69 = arith.mulf %66, %68 : vector<8x8xf32>
    %70 = vector.extract_strided_slice %6 {offsets = [0, 24], sizes = [8, 8], strides = [1, 1]} : vector<8x96xf32> to vector<8x8xf32>
    %71 = vector.extract_strided_slice %6 {offsets = [0, 56], sizes = [8, 8], strides = [1, 1]} : vector<8x96xf32> to vector<8x8xf32>
    %72 = vector.extract_strided_slice %6 {offsets = [0, 88], sizes = [8, 8], strides = [1, 1]} : vector<8x96xf32> to vector<8x8xf32>
    %c0_31 = arith.constant 0 : index
    %c3 = arith.constant 3 : index
    %c0_32 = arith.constant 0 : index
    %c0_33 = arith.constant 0 : index
    %73 = vector.load %arg4[%c0_31, %c3, %c0_32, %c0_33] : memref<1x4x8x8xf32, #tpu.memory_space<vmem>>, vector<1x1x8x8xf32>
    %74 = vector.shape_cast %73 : vector<1x1x8x8xf32> to vector<8x8xf32>
    %75 = arith.mulf %70, %74 : vector<8x8xf32>
    %cst_34 = arith.constant 0.353553385 : f32
    %76 = vector.broadcast %cst_34 : f32 to vector<8x8xf32>
    %77 = arith.mulf %75, %76 : vector<8x8xf32>
    %78 = tpu.transpose %71, [1, 0] : vector<8x8xf32> -> vector<8x8xf32>
    %cst_35 = arith.constant dense<0.000000e+00> : vector<8x8xf32>
    %79 = tpu.matmul %77, %78, %cst_35 {dimension_numbers = #tpu.dot_dimension_numbers<[1], [0], [0], [1], [0, 0, 1, 1], [], []>} : vector<8x8xf32>, vector<8x8xf32>, vector<8x8xf32> -> vector<8x8xf32>
    %cst_36 = arith.constant dense<0xFF800000> : vector<8xf32>
    %80 = vector.multi_reduction <maximumf>, %79, %cst_36 [1] : vector<8x8xf32> to vector<8xf32>
    %81 = vector.shape_cast %80 : vector<8xf32> to vector<8x1xf32>
    %82 = vector.broadcast %81 : vector<8x1xf32> to vector<8x8xf32>
    %83 = arith.subf %79, %82 : vector<8x8xf32>
    %84 = math.exp %83 : vector<8x8xf32>
    %cst_37 = arith.constant dense<0.000000e+00> : vector<8xf32>
    %85 = vector.multi_reduction <add>, %84, %cst_37 [1] : vector<8x8xf32> to vector<8xf32>
    %86 = vector.shape_cast %85 : vector<8xf32> to vector<8x1xf32>
    %cst_38 = arith.constant dense<0.000000e+00> : vector<8x8xf32>
    %87 = tpu.matmul %84, %72, %cst_38 {dimension_numbers = #tpu.dot_dimension_numbers<[1], [0], [0], [1], [0, 0, 1, 1], [], []>} : vector<8x8xf32>, vector<8x8xf32>, vector<8x8xf32> -> vector<8x8xf32>
    %88 = tpu.reciprocal %86 : vector<8x1xf32> -> vector<8x1xf32>
    %89 = vector.broadcast %88 : vector<8x1xf32> to vector<8x8xf32>
    %90 = arith.mulf %87, %89 : vector<8x8xf32>
    %91 = tpu.concatenate %27, %48, %69, %90 in 1 : vector<8x8xf32>, vector<8x8xf32>, vector<8x8xf32>, vector<8x8xf32> -> vector<8x32xf32>
    %c0_39 = arith.constant 0 : index
    %c0_40 = arith.constant 0 : index
    %c0_41 = arith.constant 0 : index
    %92 = vector.load %arg5[%c0_39, %c0_40, %c0_41] : memref<1x8x32xf32, #tpu.memory_space<vmem>>, vector<1x8x32xf32>
    %93 = vector.shape_cast %92 : vector<1x8x32xf32> to vector<8x32xf32>
    %94 = vector.shape_cast %91 : vector<8x32xf32> to vector<1x8x32xf32>
    tpu.vector_store %arg5[%c0_39, %c0_40, %c0_41], %94 {strides = array<i32>} : memref<1x8x32xf32, #tpu.memory_space<vmem>>, vector<1x8x32xf32>,
    return
  }
  func.func @transform_0(%arg0: i32) -> (i32, i32, i32) {
    %c0_i32 = arith.constant 0 : i32
    %c0_i32_0 = arith.constant 0 : i32
    %c0_i32_1 = arith.constant 0 : i32
    return %arg0, %c0_i32, %c0_i32_0 : i32, i32, i32
  }
  func.func @transform_1(%arg0: i32) -> (i32, i32) {
    %c0_i32 = arith.constant 0 : i32
    %c0_i32_0 = arith.constant 0 : i32
    %c0_i32_1 = arith.constant 0 : i32
    return %c0_i32, %c0_i32_0 : i32, i32
  }
  func.func @transform_2(%arg0: i32) -> (i32, i32) {
    %c0_i32 = arith.constant 0 : i32
    %c0_i32_0 = arith.constant 0 : i32
    %c0_i32_1 = arith.constant 0 : i32
    return %c0_i32, %c0_i32_0 : i32, i32
  }
  func.func @transform_3(%arg0: i32) -> (i32, i32, i32, i32) {
    %c0_i32 = arith.constant 0 : i32
    %c0_i32_0 = arith.constant 0 : i32
    %c0_i32_1 = arith.constant 0 : i32
    %c0_i32_2 = arith.constant 0 : i32
    return %arg0, %c0_i32, %c0_i32_0, %c0_i32_1 : i32, i32, i32, i32
  }
  func.func @transform_4(%arg0: i32) -> (i32, i32, i32) {
    %c0_i32 = arith.constant 0 : i32
    %c0_i32_0 = arith.constant 0 : i32
    %c0_i32_1 = arith.constant 0 : i32
    return %arg0, %c0_i32, %c0_i32_0 : i32, i32, i32
  }
}

</mosaic_0001>

<bundles_post_ra>
// kernel: tpu_custom_call.1
= control target key start
LH: loop header
LB: loop body
LE: loop exit
PB: predicated region body
PF: predicated region fallthrough
CT: control target
= control target key end

     0   :  { %s1926_s0 = inlined_call_operand.hbm [shape: f32[2,8,32], index: 0, kind: input, shape index: {}]   ;;  %s1927_s1 = inlined_call_operand.hbm [shape: f32[32,96], index: 1, kind: input, shape index: {}]   ;;  %s1928_s2 = inlined_call_operand.vmem [shape: f32[1,96], index: 2, kind: input, shape index: {}]   ;;  %s1929_s3 = inlined_call_operand.hbm [shape: f32[2,4,8,8], index: 3, kind: input, shape index: {}]   ;;  %s1930_s4 = inlined_call_operand.hbm [shape: f32[2,8,32], index: 4, kind: output, shape index: {}]  }
   0x1   :  { %1935 = sst [smem:[#allocation13_spill]] %s1926_s0 }
   0x2   :  { %9 = vsyncpa [#allocation3], 0 }
   0x3   :  { %11 = vsyncpa [#allocation3 + $0x1], 0 }
   0x4   :  { %12 = vsyncpa [#allocation6], 0 }
   0x5   :  { %13 = vsyncpa [#allocation4], 0 }
   0x6   :  { %15 = vsyncpa [#allocation4 + $0x1], 0  ;;  %s1597_s15 = smov 0   ;;  %s1599_s16 = smov 0  }
   0x7   :  { %s1601_s17 = smov 0   ;;  %s1603_s18 = smov 0  }
   0x8 LB: > { %s1618_s19 = sadd.s32 1, %s1547_s18   ;;  %s28_s20 = sadd.s32 1, %s1543_s17  ;;  %s1547_s18 = sphi %s1603_s18, %s1953_s18   ;;  %s1543_s17 = sphi %s1601_s17, %s1952_s17   ;;  %s1539_s16 = sphi %s1599_s16, %s1951_s16   ;;  %s1535_s15 = sphi %s1597_s15, %s1950_s15  }
   0x9   : > { %s25_s21 = ssub.s32 %s1547_s18, %s1618_s19  ;;  %p35_p0 = scmp.ne.s32.totalorder %s1543_s17, %s1539_s16 }
   0xa   : > { %p26_p1 = scmp.eq.s32.totalorder %s25_s21, 0  ;;  %p36_p2 = scmp.eq.s32.totalorder %s1547_s18, 0 }
   0xb   : > { %p1314_p4 = scmp.lt.s32.totalorder %s1547_s18, 2  ;;  %s175_s23 = sand.u32 1, %s1547_s18  }
   0xc   : > { %s1629_s22 = scalar_select %p26_p1, %s1543_s17, %s28_s20  }
   0xd   : > { %p37_p5 = por %p36_p2, %p35_p0  ;;  %s177_s24 = sand.u32 1, %s1543_s17  }
   0xe   : > { %s1178_s25 = sshll.u32 %s177_s24, 3  ;;  %s1179_s26 = sshll.u32 %s1547_s18, 7 }
   0xf   : > { %s1936_s0 = sld [smem:[#allocation13_spill]]  ;;  %s179_s30 = scalar_lea.vmem [#allocation2], %s1178_s25 }
  0x10   : > { %s186_s5 = sshll.u32 %s179_s30, 4  ;;  %p1642_p6 = pnand %p1314_p4, %p37_p5  ;;  %s1646_s5 = int_to_ptr.vmem [resolvable:$true] %s186_s5 }
  0x11   : > { %s1648_s7 = sshll.u32 %s177_s24, 5  ;;  %s1650_s8 = scalar_lea.sflag [#allocation3], %s175_s23 }
  0x12   : > { %p1387_p8 = pneg %p1642_p6 }
  0x15   : > { %s1640_s29 = scalar_lea.hbm %s1936_s0, %s1179_s26  ;;  %s1390_s12 = scalar_lea.hbm %s1936_s0, 256 }
  0x16   : > { %s1385_s9 = scalar_lea.hbm %s1640_s29, 128  ;;  %p1391_p11 = scmp.lt.u32.totalorder %s1640_s29, %s1936_s0 }
  0x17   : > { %p1386_p7 = scmp.ne.s32.totalorder %s1640_s29, %s1385_s9  ;;  %p1392_p12 = scmp.lt.u32.totalorder %s1390_s12, %s1385_s9 }
  0x18   : > { %p1394_p1 = scmp.lt.u32.totalorder %s1385_s9, %s1640_s29 }
  0x19   : > { %p1388_p9 = pnand %p1387_p8, %p1386_p7  ;;  %p1393_p13 = por %p1392_p12, %p1391_p11 }
  0x1b   : > { %p1389_p10 = pneg %p1388_p9  ;;  %p1395_p2 = por %p1394_p1, %p1393_p13 }
  0x1d   : > { %p1396_p4 = pnand %p1395_p2, %p1389_p10 }
  0x1f   : > { %1399 = shalt.err (!%p1396_p4)
}
  0x20   : > { %s1400_s20 = scalar_lea.vmem %s1646_s5, 128  ;;  %s1549_s21 = smov [#allocation2]  }
  0x21   : > { %p1401_p5 = scmp.ne.s32.totalorder %s1646_s5, %s1400_s20  ;;  %s1405_s23 = sshll.u32 %s1549_s21, 4  ;;  %s1406_s23 = int_to_ptr.vmem [resolvable:$false] %s1405_s23 }
  0x22   : > { %s1407_s24 = scalar_lea.vmem %s1406_s23, 256  ;;  %p1408_p3 = scmp.lt.s32.totalorder %s1646_s5, %s1406_s23 }
  0x23   : > { %p1403_p7 = pnand %p1401_p5, %p1387_p8  ;;  %p1409_p11 = scmp.lt.s32.totalorder %s1407_s24, %s1400_s20 }
  0x25   : > { %p1404_p9 = pneg %p1403_p7  ;;  %p1410_p12 = por %p1409_p11, %p1408_p3 }
  0x27   : > { %p1411_p13 = pnand %p1410_p12, %p1404_p9 }
  0x29   : > { %1414 = shalt.err (!%p1411_p13)
}
  0x2a   : > { %1305 = dma.hbm_to_vmem [thread:$0]  (!%p1642_p6), %s1640_s29, 128, %s1646_s5, %s1650_s8  }
  0x2b   : > { %s197_s25 = scalar_lea.vmem [#allocation7], %s1648_s7  ;;  %s1680_s27 = sadd.s32 4294967295, %s1547_s18  }
  0x2c   : > { %s204_s26 = sshll.u32 %s197_s25, 4  ;;  %s1174_s28 = sadd.s32 4294967294, %s1547_s18   ;;  %s1706_s26 = int_to_ptr.vmem [resolvable:$true] %s204_s26 }
  0x2d   : > { %p41_p3 = scmp.ne.s32.totalorder %s1539_s16, %s1535_s15  ;;  %p1931_p10 = scmp.eq.s32.totalorder %s1680_s27, 0 }
  0x2e   : > { %p133_p1 = scmp.eq.s32.totalorder %s1680_s27, 1  ;;  %p139_p2 = scmp.eq.s32.totalorder %s1174_s28, 1 }
  0x2f   : > { %p1689_p4 = por %p1931_p10, %p41_p3  ;;  %p1175_p5 = scmp.ge.s32.totalorder %s1547_s18, 1 }
  0x30   : > { %p1697_p7 = por %p133_p1, %p35_p0  ;;  %p1701_p9 = por %p139_p2, %p41_p3 }
  0x31   : > { %s1938_s30 = scalar_select %p1689_p4, 1, 0 }
  0x32   : > { %s1939_s29 = scalar_select %p1697_p7, 1, 0 }
  0x33   : > { %s1940_s5 = scalar_select %p1701_p9, 1, 0 }
  0x34   : > { %p146_p11 = scmp.lt.s32.totalorder %s1547_s18, 3  ;;  %s1550_s9 = smov [#allocation5]  }
  0x35   : > { %s158_s10 = sshll.u32 %s1550_s9, 4  ;;  %s1209_s11 = sshll.u32 %s1547_s18, 9  ;;  %s1720_s10 = int_to_ptr.vmem [resolvable:$true] %s158_s10 }
  0x36   : > { %p1708_p12 = pnand %p1175_p5, %p146_p11  ;;  %s1718_s14 = scalar_lea.hbm %s1929_s3, %s1209_s11 }
  0x37   : > { %s1415_s21 = scalar_lea.hbm %s1718_s14, 512  ;;  %s1420_s25 = scalar_lea.hbm %s1929_s3, 1024 }
  0x38   : > { %s1941_s7 = scalar_select %p1708_p12, 1, 0 }
  0x39   : > { %p1298_p13 = pneg %p1708_p12  ;;  %p1416_p3 = scmp.ne.s32.totalorder %s1718_s14, %s1415_s21 }
  0x3a   : > { %p1421_p5 = scmp.lt.u32.totalorder %s1718_s14, %s1929_s3  ;;  %p1422_p11 = scmp.lt.u32.totalorder %s1420_s25, %s1415_s21 }
  0x3b   : > { %p1724_p0 = pnand %p1298_p13, %p1931_p10  ;;  %p1418_p1 = pnand %p1416_p3, %p1387_p8 }
  0x3c   : > { %p1423_p9 = por %p1422_p11, %p1421_p5  ;;  %p1424_p13 = scmp.lt.u32.totalorder %s1415_s21, %s1718_s14 }
  0x3d   : > { %p1419_p2 = pneg %p1418_p1 }
  0x3e   : > { %p1425_p10 = por %p1424_p13, %p1423_p9 }
  0x40   : > { %p1426_p7 = pnand %p1425_p10, %p1419_p2 }
  0x42   : > { %1429 = shalt.err (!%p1426_p7)
}
  0x43   : > { %s1430_s11 = scalar_lea.vmem %s1706_s26, 512  ;;  %s1551_s12 = smov [#allocation7]  }
  0x44   : > { %p1431_p3 = scmp.ne.s32.totalorder %s1706_s26, %s1430_s11  ;;  %s1435_s13 = sshll.u32 %s1551_s12, 4  ;;  %s1436_s13 = int_to_ptr.vmem [resolvable:$false] %s1435_s13 }
  0x45   : > { %s1437_s23 = scalar_lea.vmem %s1436_s13, 1024  ;;  %p1438_p12 = scmp.lt.s32.totalorder %s1706_s26, %s1436_s13 }
  0x46   : > { %p1433_p1 = pnand %p1431_p3, %p1387_p8  ;;  %p1439_p5 = scmp.lt.s32.totalorder %s1437_s23, %s1430_s11 }
  0x48   : > { %p1434_p4 = pneg %p1433_p1  ;;  %p1440_p11 = por %p1439_p5, %p1438_p12 }
  0x4a   : > { %p1441_p9 = pnand %p1440_p11, %p1434_p4 }
  0x4c   : > { %1444 = shalt.err (!%p1441_p9)
}
  0x4d   : > { %s1552_s21 = smov 128   ;;  %s1553_s24 = smov 8  }
  0x4e   : > { %1308 = dma.hbm_to_vmem [thread:$0]  (!%p1642_p6), %s1718_s14, 512, %s1706_s26, %s1650_s8, %s1552_s21, %s1552_s21, %s1553_s24  }
  0x4f   : > { %s1445_s9 = scalar_lea.hbm %s1927_s1, 512  ;;  %p1447_p10 = pneg %p1724_p0 }
  0x50   : > { %p1446_p8 = scmp.ne.s32.totalorder %s1927_s1, %s1445_s9  ;;  %p1452_p12 = scmp.lt.u32.totalorder %s1445_s9, %s1927_s1 }
  0x52   : > { %p1448_p4 = pnand %p1447_p10, %p1446_p8 }
  0x54   : > { %p1449_p7 = pneg %p1448_p4 }
  0x56   : > { %p1454_p2 = pnand %p1452_p12, %p1449_p7 }
  0x58   : > { %1457 = shalt.err (!%p1454_p2)
}
  0x59   : > { %s1458_s6 = scalar_lea.vmem %s1720_s10, 512  ;;  %p1466_p1 = scmp.lt.s32.totalorder %s1720_s10, %s1720_s10 }
  0x5a   : > { %p1459_p6 = scmp.ne.s32.totalorder %s1720_s10, %s1458_s6  ;;  %p1467_p5 = scmp.lt.s32.totalorder %s1458_s6, %s1458_s6 }
  0x5c   : > { %p1461_p13 = pnand %p1459_p6, %p1447_p10  ;;  %p1468_p11 = por %p1467_p5, %p1466_p1 }
  0x5e   : > { %p1462_p3 = pneg %p1461_p13 }
  0x60   : > { %p1469_p9 = pnand %p1468_p11, %p1462_p3 }
  0x62   : > { %1472 = shalt.err (!%p1469_p9)
}
  0x63   : > { %1301 = dma.hbm_to_vmem [thread:$0]  (!%p1724_p0), %s1927_s1, 512, %s1720_s10, [#allocation6], %s1552_s21, %s1552_s21, %s1553_s24  }
  0x64   : > { %p1943_p8 = scmp.ne.s32.totalorder %s1941_s7, 0 }
  0x65   : > { %s218_s26 = sand.u32 (!%p1943_p8), 1, %s1680_s27   ;;  %s1777_s14 = sand.u32 (!%p1943_p8), 1, %s1539_s16  }
  0x66   : > { %216 = sbr.rel (%p1943_p8) target bundleno = 1184 (0x4a0), region = 36  ;;  %s1184_s23 = sshll.u32 (!%p1943_p8), %s1777_s14, 3 }
  0x67   : > { %s219_s25 = scalar_lea.sflag (!%p1943_p8), [#allocation3], %s218_s26  ;;  %s1782_s20 = scalar_lea.vmem (!%p1943_p8), [#allocation2], %s1184_s23 }
  0x68   : > { %p1944_p10 = scmp.ne.s32.totalorder (!%p1943_p8), %s1938_s30, 0 }
  0x6d   : > { %1518 = dma.done.wait (%p1944_p10), %s219_s25, 128  }
  0x6e   : > { %1520 = vsyncadd (%p1944_p10), %s219_s25, 4294967168  ;;  %p1945_p0 = scmp.eq.s32.totalorder %s1680_s27, 0 }
  0x70   : > { %1522 = dma.done.wait (%p1945_p0), [#allocation6], 512   ;;  %p1946_p4 = pmov %p1945_p0 }
  0x71   : > { %s1186_s7 = sshll.u32 %s1777_s14, 5 }
  0x72   : > { %1524 = vsyncadd (%p1946_p4), [#allocation6], 4294966784  ;;  %s1793_s10 = scalar_lea.vmem [#allocation7], %s1186_s7 }
  0x73   : > { %1526 = dma.done.wait (%p1944_p10), %s219_s25, 512  }
  0x74   : > { %1528 = vsyncadd (%p1944_p10), %s219_s25, 4294966784  ;;  %v1554_v0 = vmov 0.0|0.0   ;;  %vm1555_vm0 = vmmov 0   ;;  %v1556_v1 = vmov 0.0   ;;  %v266_v2 = vld [vmem:[#allocation5] sm:$0xff]  ;;  %v267_v3 = vld [vmem:[#allocation5 + $0x8] sm:$0xff] }
  0x75   : > { %1282 = vmatprep.subr.bf16.mxu0 %v1554_v0  ;;  %1239 = vmatprep.mubr.msk.f32.mxu0 %vm1555_vm0, %v1556_v1  ;;  %v268_v4 = vld [vmem:[#allocation5 + $0x10] sm:$0xff]  ;;  %v1283_v5 = vpack.c.bf16 %v267_v3, %v266_v2  ;;  %v269_v6 = vld [vmem:[#allocation5 + $0x18] sm:$0xff]  ;;  %v1193_v7 = vld [vmem:[%s1793_s10 + $0x8] sm:$0xff]  ;;  %s1557_s30 = smov 8   ;;  %s1558_s21 = smov 24   ;;  %vm277_vm1 = vcmask 261120  }
  0x76   : > { %1242 = vmatprep.subr.mxu1 %v1556_v1  ;;  %1244 = vmatprep.mubr.msk.f32.mxu1 %vm1555_vm0, %v1556_v1  ;;  %v1201_v8 = vld [vmem:[%s1793_s10 + $0x18] sm:$0xff]  ;;  %v1286_v9 = vpack.c.bf16 %v269_v6, %v268_v4  ;;  %v1197_v10 = vld [vmem:[%s1793_s10 + $0x10] sm:$0xff]  ;;  %s1559_s24 = smov 16   ;;  %s1560_s12 = smov 88   ;;  %v351_v25 = vld [vmem:[%s1793_s10] sm:$0xff]  ;;  %vm357_vm2 = vcmask 64512  }
  0x77   : > { %523 = vrot.lane.b32.xlu0 %v1193_v7, %s1557_s30  ;;  %1284 = vmatpush3.bf16.msra.mxu0 %v1283_v5  ;;  %v265_v11 = vld [vmem:[%s1782_s20] sm:$0xff]  ;;  %s1561_s11 = smov 96   ;;  %s1562_s13 = smov 80   ;;  %vm1055_vm3 = vcmask 130048   ;;  %vm1057_vm4 = vcmask 195584  }
  0x78   : > { %871 = vrot.lane.b32.xlu1 %v1201_v8, %s1558_s21  ;;  %1285 = vmatprep.subr.bf16.mxu0 %v1554_v0  ;;  %v1188_v13 = vld [vmem:[%s1928_s2] ss:$0 sm:$0xff]  ;;  %s1563_s6 = smov 120   ;;  %s1564_s0 = smov 72  }
  0x79   : > { %s1565_s8 = smov 112   ;;  %s1566_s26 = smov 104  }
  0x7a   : > { %s1567_s25 = smov 64   ;;  %s1568_s20 = smov 48  }
  0x7b   : > { %697 = vrot.lane.b32.xlu0 %v1197_v10, %s1559_s24  ;;  %1287 = vmatpush3.bf16.msra.mxu0 %v1286_v9  ;;  %s1569_s7 = smov 40   ;;  %s1570_s10 = smov 56  }
  0x7c   : > { %1252 = vmatprep.subr.mxu0 %v1556_v1  ;;  %s264_s28 = scalar_lea.vmem [#allocation8], %s1184_s23  ;;  %p1947_p12 = scmp.ne.s32.totalorder %s1939_s29, 0 }
  0x7d   : > { %s1074_s9 = sshll.u32 %s264_s28, 4  ;;  %s1883_s9 = int_to_ptr.vmem [resolvable:$true] %s1074_s9 }
  0x7e   : > { %1240 = vmatmul.mubr.msk.f32.vlgmr.msra.gmra.mrb[0].mxu0 %vm277_vm1, %v265_v11  ;;  %s1473_s23 = scalar_lea.vmem %s1883_s9, 128 }
  0x7f   : > { %1254 = vmatprep.mubr.msk.f32.mxu0 %vm1555_vm0, %v1556_v1  ;;  %p1474_p7 = scmp.ne.s32.totalorder %s1883_s9, %s1473_s23 }
  0x81   : > { %p1475_p2 = pnand %p1474_p7, %p1947_p12 }
  0x83   : > { %p1476_p6 = pneg %p1475_p2 }
  0xe9   : > { %v524_v12 = vpop.permute.xlu0 %523 }
  0xea   : > { %v872_v21 = vpop.permute.xlu1 %871 }
  0xed   : > { %v698_v17 = vpop.permute.xlu0 %697 }
 0x151   : > { %v347_v14 = vpop.f32.mrb[0].mxu0 }
 0x152   : > { %v1818_v15 = vadd.f32 %v1188_v13, %v347_v14  ;;  %v1241_v16 = vpop.f32.mrb[1].mxu0 }
 0x154   : > { %531 = vrot.lane.b32.xlu0 %v1818_v15, %s1560_s12  ;;  %355 = vrot.lane.b32.xlu1 %v1818_v15, %s1561_s11  ;;  %v526_v18 = vmul.f32 %v524_v12, %v1818_v15  ;;  %v700_v19 = vmul.f32 %v698_v17, %v1818_v15  ;;  %v874_v22 = vmul.f32 %v872_v21, %v1818_v15  ;;  %s1571_s11 = smov [#allocation8]  }
 0x155   : > { %v352_v26 = vmul.f32 %v351_v25, %v1818_v15 }
 0x156   : > { %v527_v20 = vmul.f32 0.35355338, %v526_v18  ;;  %v701_v23 = vmul.f32 0.35355338, %v700_v19  ;;  %v875_v24 = vmul.f32 0.35355338, %v874_v22 }
 0x157   : > { %v353_v29 = vmul.f32 0.35355338, %v352_v26 }
 0x158   : > { %705 = vrot.lane.b32.xlu0 %v1818_v15, %s1562_s13  ;;  %529 = vrot.lane.b32.xlu1 %v527_v20, %s1563_s6  ;;  %s1477_s13 = sshll.u32 %s1571_s11, 4  ;;  %s1478_s13 = int_to_ptr.vmem [resolvable:$false] %s1477_s13 }
 0x159   : > { %s1479_s6 = scalar_lea.vmem %s1478_s13, 256  ;;  %p1480_p13 = scmp.lt.s32.totalorder %s1883_s9, %s1478_s13 }
 0x15a   : > { %p1481_p3 = scmp.lt.s32.totalorder %s1479_s6, %s1473_s23 }
 0x15c   : > { %879 = vrot.lane.b32.xlu0 %v1818_v15, %s1564_s0  ;;  %703 = vrot.lane.b32.xlu1 %v701_v23, %s1565_s8  ;;  %p1482_p1 = por %p1481_p3, %p1480_p13 }
 0x15e   : > { %p1483_p5 = pnand %p1482_p1, %p1476_p6 }
 0x160   : > { %877 = vrot.lane.b32.xlu1 %v875_v24, %s1566_s26 }
 0x164   : > { %442 = vrot.lane.b32.xlu1 %v1818_v15, %s1567_s25 }
 0x1c6   : > { %v532_v27 = vpop.permute.xlu0 %531  ;;  %v356_v28 = vpop.permute.xlu1 %355 }
 0x1c7   : > { %1243 = vmatpush3.xpose.msk.msra.mxu1 %vm357_vm2, %v356_v28  ;;  %1253 = vmatpush3.xpose.msk.msra.mxu0 %vm357_vm2, %v532_v27 }
 0x1c8   : > { %1262 = vmatprep.subr.mxu0 %v1556_v1  ;;  %1247 = vmatprep.subr.mxu1 %v1556_v1 }
 0x1ca   : > { %v706_v30 = vpop.permute.xlu0 %705  ;;  %v530_v31 = vpop.permute.xlu1 %529  ;;  %1245 = vmatmul.mubr.msk.f32.vlgmr.msra.gmra.mrb[0].mxu1 %vm357_vm2, %v353_v29 }
 0x1cb   : > { %1255 = vmatmul.mubr.msk.f32.vlgmr.msra.gmra.mrb[2].mxu0 %vm357_vm2, %v530_v31  ;;  %1249 = vmatprep.mubr.msk.f32.mxu1 %vm1555_vm0, %v1556_v1 }
 0x1cc   : > { %1263 = vmatpush3.xpose.msk.msra.mxu0 %vm357_vm2, %v706_v30  ;;  %1264 = vmatprep.mubr.msk.f32.mxu0 %vm1555_vm0, %v1556_v1 }
 0x1cd   : > { %1272 = vmatprep.subr.mxu0 %v1556_v1 }
 0x1ce   : > { %v880_v32 = vpop.permute.xlu0 %879  ;;  %v704_v33 = vpop.permute.xlu1 %703 }
 0x1cf   : > { %1265 = vmatmul.mubr.msk.f32.vlgmr.msra.gmra.mrb[4].mxu0 %vm357_vm2, %v704_v33 }
 0x1d0   : > { %1273 = vmatpush3.xpose.msk.msra.mxu0 %vm357_vm2, %v880_v32  ;;  %1274 = vmatprep.mubr.msk.f32.mxu0 %vm1555_vm0, %v1556_v1 }
 0x1d2   : > { %v878_v34 = vpop.permute.xlu1 %877 }
 0x1d3   : > { %1275 = vmatmul.mubr.msk.f32.vlgmr.msra.gmra.mrb[6].mxu0 %vm357_vm2, %v878_v34 }
 0x1d6   : > { %v443_v35 = vpop.permute.xlu1 %442 }
 0x1d7   : > { %1248 = vmatpush3.msra.mxu1 %v443_v35 }
 0x1d8   : > { %1257 = vmatprep.subr.mxu1 %v1556_v1 }
 0x29d   : > { %v429_v36 = vpop.f32.mrb[0].mxu1 }
 0x29e   : > { %v1246_v37 = vpop.f32.mrb[1].mxu1  ;;  %v603_v38 = vpop.f32.mrb[2].mxu0  ;;  %v433_v39 = vsel %vm357_vm2, %v429_v36, -inf }
 0x29f   : > { %434 = vmax.xlane.f32.xlu0 %v433_v39  ;;  %v1256_v40 = vpop.f32.mrb[3].mxu0  ;;  %v607_v41 = vsel %vm357_vm2, %v603_v38, -inf }
 0x2a0   : > { %608 = vmax.xlane.f32.xlu1 %v607_v41 }
 0x2a2   : > { %v777_v42 = vpop.f32.mrb[4].mxu0 }
 0x2a3   : > { %v1266_v43 = vpop.f32.mrb[5].mxu0  ;;  %v781_v44 = vsel %vm357_vm2, %v777_v42, -inf }
 0x2a4   : > { %782 = vmax.xlane.f32.xlu0 %v781_v44 }
 0x2a6   : > { %v951_v45 = vpop.f32.mrb[6].mxu0 }
 0x2a7   : > { %v1276_v46 = vpop.f32.mrb[7].mxu0  ;;  %v955_v47 = vsel %vm357_vm2, %v951_v45, -inf }
 0x2a8   : > { %956 = vmax.xlane.f32.xlu0 %v955_v47 }
 0x2b1   : > { %790 = vrot.lane.b32.xlu1 %v1818_v15, %s1568_s20 }
 0x2b5   : > { %964 = vrot.lane.b32.xlu1 %v1818_v15, %s1569_s7 }
 0x2be   : > { %616 = vrot.lane.b32.xlu0 %v1818_v15, %s1570_s10 }
 0x32c   : > { %v435_v48 = vpop.xlane.xlu0 %434 }
 0x32d   : > { %v436_v49 = vsub.f32 %v429_v36, %v435_v48  ;;  %v609_v50 = vpop.xlane.xlu1 %608 }
 0x32e   : > { %v610_v51 = vsub.f32 %v603_v38, %v609_v50 }
 0x32f   : > { %v437_v52 = vmul.f32 1.442695, %v436_v49 }
 0x330   : > { %v611_v53 = vmul.f32 1.442695, %v610_v51 }
 0x331   : > { %1369 = vpow2.f32 %v437_v52  ;;  %v783_v54 = vpop.xlane.xlu0 %782  ;;  %v791_v0 = vpop.permute.xlu1 %790 }
 0x332   : > { %1371 = vpow2.f32 %v611_v53  ;;  %v784_v55 = vsub.f32 %v777_v42, %v783_v54 }
 0x334   : > { %v785_v56 = vmul.f32 1.442695, %v784_v55 }
 0x335   : > { %v957_v57 = vpop.xlane.xlu0 %956  ;;  %v965_v5 = vpop.permute.xlu1 %964 }
 0x336   : > { %1373 = vpow2.f32 %v785_v56  ;;  %v958_v58 = vsub.f32 %v951_v45, %v957_v57 }
 0x338   : > { %v959_v59 = vmul.f32 1.442695, %v958_v58 }
 0x339   : > { %v617_v62 = vpop.permute.xlu0 %616 }
 0x33a   : > { %1375 = vpow2.f32 %v959_v59 }
 0x33b   : > { %v1370_v60 = vpop.eup %1369 }
 0x33c   : > { %v1372_v61 = vpop.eup %1371  ;;  %1250 = vmatmul.mubr.msk.f32.vlgmr.msra.gmra.mrb[2].mxu1 %vm357_vm2, %v1370_v60  ;;  %v439_v7 = vsel %vm357_vm2, %v1370_v60, 0.0 }
 0x33d   : > { %1258 = vmatpush3.msra.mxu1 %v617_v62  ;;  %v613_v63 = vsel %vm357_vm2, %v1372_v61, 0.0  ;;  %1259 = vmatprep.mubr.msk.f32.mxu1 %vm1555_vm0, %v1556_v1 }
 0x33e   : > { %614 = vadd.xlane.f32.xlu0 %v613_v63  ;;  %1267 = vmatprep.subr.mxu1 %v1556_v1 }
 0x340   : > { %v1374_v2 = vpop.eup %1373  ;;  %1260 = vmatmul.mubr.msk.f32.vlgmr.msra.gmra.mrb[4].mxu1 %vm357_vm2, %v1372_v61 }
 0x341   : > { %1268 = vmatpush3.msra.mxu1 %v791_v0  ;;  %v787_v3 = vsel %vm357_vm2, %v1374_v2, 0.0  ;;  %1269 = vmatprep.mubr.msk.f32.mxu1 %vm1555_vm0, %v1556_v1 }
 0x342   : > { %788 = vadd.xlane.f32.xlu1 %v787_v3  ;;  %1277 = vmatprep.subr.mxu1 %v1556_v1 }
 0x344   : > { %v1376_v4 = vpop.eup %1375  ;;  %1270 = vmatmul.mubr.msk.f32.vlgmr.msra.gmra.mrb[6].mxu1 %vm357_vm2, %v1374_v2 }
 0x345   : > { %1278 = vmatpush3.msra.mxu1 %v965_v5  ;;  %v961_v6 = vsel %vm357_vm2, %v1376_v4, 0.0  ;;  %1279 = vmatprep.mubr.msk.f32.mxu1 %vm1555_vm0, %v1556_v1 }
 0x346   : > { %962 = vadd.xlane.f32.xlu0 %v961_v6 }
 0x348   : > { %1280 = vmatmul.mubr.msk.f32.vlgmr.msra.gmra.mrb[8].mxu1 %vm357_vm2, %v1376_v4 }
 0x34a   : > { %440 = vadd.xlane.f32.xlu0 %v439_v7 }
 0x3cb   : > { %v615_v8 = vpop.xlane.xlu0 %614 }
 0x3cc   : > { %1377 = vrcp.f32 %v615_v8 }
 0x3cf   : > { %v789_v9 = vpop.xlane.xlu1 %788 }
 0x3d0   : > { %1379 = vrcp.f32 %v789_v9 }
 0x3d3   : > { %v963_v10 = vpop.xlane.xlu0 %962 }
 0x3d4   : > { %1381 = vrcp.f32 %v963_v10 }
 0x3d6   : > { %v1378_v13 = vpop.eup %1377 }
 0x3d7   : > { %v441_v24 = vpop.xlane.xlu0 %440 }
 0x3d8   : > { %1383 = vrcp.f32 %v441_v24 }
 0x3da   : > { %v1380_v1 = vpop.eup %1379 }
 0x3de   : > { %v1382_v20 = vpop.eup %1381 }
 0x3e2   : > { %v1384_v25 = vpop.eup %1383 }
 0x40f   : > { %v514_v11 = vpop.f32.mrb[2].mxu1 }
 0x410   : > { %v1251_v12 = vpop.f32.mrb[3].mxu1  ;;  %v519_v27 = vmul.f32 %v1384_v25, %v514_v11 }
 0x413   : > { %v688_v14 = vpop.f32.mrb[4].mxu1 }
 0x414   : > { %v693_v15 = vmul.f32 %v1378_v13, %v688_v14  ;;  %v1261_v16 = vpop.f32.mrb[5].mxu1 }
 0x416   : > { %1043 = vrot.lane.b32.xlu1 %v693_v15, %s1557_s30  ;;  %s1206_s30 = sshll.u32 %s1680_s27, 7  ;;  %s1061_s27 = scalar_lea.sflag [#allocation4], %s1777_s14 }
 0x417   : > { %v862_v17 = vpop.f32.mrb[6].mxu1  ;;  %s1881_s12 = scalar_lea.hbm %s1930_s4, %s1206_s30 }
 0x418   : > { %v867_v18 = vmul.f32 %v1380_v1, %v862_v17  ;;  %v1271_v19 = vpop.f32.mrb[7].mxu1 }
 0x41a   : > { %1047 = vrot.lane.b32.xlu0 %v867_v18, %s1559_s24 }
 0x41b   : > { %v1036_v21 = vpop.f32.mrb[8].mxu1 }
 0x41c   : > { %v1041_v22 = vmul.f32 %v1382_v20, %v1036_v21  ;;  %v1281_v23 = vpop.f32.mrb[9].mxu1 }
 0x41e   : > { %1051 = vrot.lane.b32.xlu1 %v1041_v22, %s1558_s21 }
 0x488   : > { %v1044_v26 = vpop.permute.xlu1 %1043 }
 0x489   : > { %v1054_v29 = vsel %vm357_vm2, %v519_v27, %v1044_v26 }
 0x48c   : > { %v1048_v28 = vpop.permute.xlu0 %1047 }
 0x48d   : > { %v1056_v30 = vsel %vm1055_vm3, %v1054_v29, %v1048_v28 }
 0x490   : > { %v1052_v31 = vpop.permute.xlu1 %1051 }
 0x491   : > { %v1058_v32 = vsel %vm1057_vm4, %v1056_v30, %v1052_v31 }
 0x492   : > { %1059 = vst.msk [vmem:[%s264_s28] sm:$0xff] %vm277_vm1, %v1058_v32 }
 0x493   : > { %1486 = shalt.err (!%p1483_p5)
}
 0x494   : > { %s1487_s14 = scalar_lea.hbm %s1881_s12, 128  ;;  %s1491_s26 = scalar_lea.hbm %s1930_s4, 256 }
 0x495   : > { %p1488_p11 = scmp.ne.s32.totalorder %s1881_s12, %s1487_s14  ;;  %p1492_p10 = scmp.lt.u32.totalorder %s1881_s12, %s1930_s4 }
 0x496   : > { %p1493_p0 = scmp.lt.u32.totalorder %s1491_s26, %s1487_s14  ;;  %p1495_p7 = scmp.lt.u32.totalorder %s1487_s14, %s1881_s12 }
 0x497   : > { %p1489_p9 = pnand %p1488_p11, %p1947_p12 }
 0x498   : > { %p1494_p4 = por %p1493_p0, %p1492_p10 }
 0x499   : > { %p1490_p8 = pneg %p1489_p9 }
 0x49a   : > { %p1496_p2 = por %p1495_p7, %p1494_p4 }
 0x49c   : > { %p1497_p6 = pnand %p1496_p2, %p1490_p8 }
 0x49e   : > { %1500 = shalt.err (!%p1497_p6)
}
 0x49f   : > { %1296 = dma.vmem_to_hbm [thread:$0]  (%p1947_p12), %s1883_s9, 128, %s1881_s12, %s1061_s27  }
 0x4a0 PF: > { %s1086_s7 = sand.u32 1, %s1535_s15   ;;  %p1948_p13 = scmp.ne.s32.totalorder %s1940_s5, 0 }
 0x4a1   : > { %p1949_p3 = scmp.ge.s32.totalorder %s1547_s18, 2  ;;  %s1087_s10 = scalar_lea.sflag [#allocation4], %s1086_s7 }
 0x4a3   : > { %p1310_p1 = pnand %p1949_p3, %p1948_p13 }
 0x4a5   : > { %1530 = dma.done.wait (!%p1310_p1), %s1087_s10, 128  }
 0x4a6   : > { %1532 = vsyncadd (!%p1310_p1), %s1087_s10, 4294967168  ;;  %p18_p5 = scmp.ge.s32.totalorder %s1618_s19, 4   ;;  %s1950_s15 = smov %s1539_s16 }
 0x4a7   : > { %s1951_s16 = smov %s1543_s17  ;;  %s1952_s17 = smov %s1629_s22 }
 0x4a8   : > { %s1953_s18 = smov %s1618_s19  ;;  %20 = sbr.rel (!%p18_p5) target bundleno = 8 (0x8), region = 99 }
 0x4af   :  { %1092 = vsyncpa [#allocation3], 1 }
 0x4b0   :  { %1094 = vsyncpa [#allocation3 + $0x1], 1 }
 0x4b1   :  { %1095 = vsyncpa [#allocation6], 1 }
 0x4b2   :  { %1096 = vsyncpa [#allocation4], 1 }
 0x4b3   :  { %1098 = vsyncpa [#allocation4 + $0x1], 1 }

</bundles_post_ra>
